<compile_context>
chip_gen: v7x
topology: tpu7x:2x2x1
jax: 0.10.0
libtpu: 0.0.40
codegen_flags: <defaults>
</compile_context>

<pallas_src>
import functools

import jax
import jax.numpy as jnp
from jax.experimental import pallas as pl
from jax.experimental.pallas import tpu as pltpu

_LANE = 128


def _comfort_cost_kernel(xy_ref, o_ref, *, t_valid,
                         wj_lat, wj_lon, wa_lat, wa_lon):
    x = xy_ref[0]          # [T_pad, TILE_B]  (time on sublanes, batch on lanes)
    y = xy_ref[1]
    t_pad = x.shape[0]

    def shift_up(a):
        # out[t] = a[t + 1]  (row t_pad-1 wraps around; wrapped rows are
        # masked out of the reduction below)
        return pltpu.roll(a, t_pad - 1, axis=0)

    # Raw finite differences (dt powers are folded into the scalar weights).
    d1x = shift_up(x) - x                    # ~ vx * dt     (valid rows t < T-1)
    d1y = shift_up(y) - y
    s1x = shift_up(d1x)                      # ~ vx * dt at t+1 (valid t < T-2)
    s1y = shift_up(d1y)
    d2x = s1x - d1x                          # ~ ax * dt^2   (valid rows t < T-2)
    d2y = s1y - d1y

    # Heading at t+1 straight from the shifted first differences (no extra
    # rolls, no atan2):  cos = vx/|v|, sin = vy/|v|;
    # atan2(0, 0) = 0  ->  (cos, sin) = (1, 0)  (matches the reference).
    speed2 = s1x * s1x + s1y * s1y
    inv_speed = jax.lax.rsqrt(jnp.maximum(speed2, 1e-36))
    safe = speed2 > 0.0
    cos_n = jnp.where(safe, s1x * inv_speed, 1.0)
    sin_n = jnp.where(safe, s1y * inv_speed, 0.0)

    # Project accelerations onto the heading frame at t+1.
    lon_acc = d2x * cos_n + d2y * sin_n      # ~ lon_acc * dt^2 (valid t < T-2)
    lat_acc = d2y * cos_n - d2x * sin_n

    # Jerks.
    lon_jerk = shift_up(lon_acc) - lon_acc   # ~ lon_jerk * dt^3 (valid t < T-3)
    lat_jerk = shift_up(lat_acc) - lat_acc

    acc_term = wa_lat * lat_acc * lat_acc + wa_lon * lon_acc * lon_acc
    jerk_term = wj_lat * lat_jerk * lat_jerk + wj_lon * lon_jerk * lon_jerk

    # Row masks as [1, T_pad] 0/1 vectors; masking + time reduction happen as
    # two tiny matmuls on the (otherwise idle) MXU.  All terms on valid lanes
    # are finite (wrapped/padded rows are differences of finite data), so the
    # multiply-by-zero mask is safe.
    row = jax.lax.broadcasted_iota(jnp.int32, (1, t_pad), 1)
    acc_mask = (row < (t_valid - 2)).astype(jnp.float32)
    jerk_mask = (row < (t_valid - 3)).astype(jnp.float32)

    o_ref[...] = (
        jnp.dot(acc_mask, acc_term, preferred_element_type=jnp.float32)
        + jnp.dot(jerk_mask, jerk_term, preferred_element_type=jnp.float32))


def _round_up(a: int, m: int) -> int:
    return (a + m - 1) // m * m


def _ceil_div(a: int, b: int) -> int:
    return -(-a // b)


def comfort_cost(trajectories: jax.Array,
                 dt: float = 0.1,
                 lateral_jerk_weight: float = 1.0,
                 longitudinal_jerk_weight: float = 1.0,
                 lateral_accel_weight: float = 0.5,
                 longitudinal_accel_weight: float = 0.5) -> jax.Array:
    """trajectories: [B, T, 2] float32 -> comfort cost [B] float32."""
    B, T, C = trajectories.shape
    assert C == 2 and T >= 4, "need [B, T>=4, 2] trajectories"

    # Single layout transform: channel split fused with the [2, T, B] transpose
    # so time lands on sublanes and batch on lanes inside the kernel.
    xy = jnp.transpose(trajectories.astype(jnp.float32), (2, 1, 0))   # [2, T, B]

    T_pad = _round_up(T, 8)
    pad_t = T_pad - T                       # usually 0 (T already % 8 == 0)
    pad_b = (_LANE - B) if B < _LANE else 0  # tiny-batch case only
    if pad_t or pad_b:
        # Tiny pad; XLA fuses it with the transpose copy above. Large batches
        # are NOT padded -- partial last blocks are handled by Pallas.
        xy = jnp.pad(xy, ((0, 0), (0, pad_t), (0, pad_b)))
    B_arr = B + pad_b                       # lane extent of the kernel input

    # ---- batch tile selection -------------------------------------------------
    if B_arr <= _LANE:
        tile_b = _LANE
    else:
        # VMEM budget per block: double-buffered [2,T_pad,tile] input (4 planes)
        # + ~16 materialized [T_pad, tile] f32 temporaries (rolls break fusion).
        vmem_budget = 20 * 1024 * 1024      # leaves headroom in v7x's 32 MiB scoped VMEM
        bytes_per_lane = 20 * T_pad * 4
        max_tile = max(_LANE, (vmem_budget // bytes_per_lane) // _LANE * _LANE)
        b128 = _round_up(B_arr, _LANE)
        # >= 2 grid steps whenever there is enough batch to split, so the
        # "parallel" axis shards across both v7x TensorCores; tile tracks B so
        # lane-padding waste in the last block stays below 128 lanes.
        min_tiles = 2 if b128 >= 2 * _LANE else 1
        n_tiles = max(min_tiles, _ceil_div(b128, max_tile))
        tile_b = min(max_tile, _round_up(_ceil_div(b128, n_tiles), _LANE))
    grid_b = _ceil_div(B_arr, tile_b)

    # Explicit VMEM limit (2x the estimated per-block footprint, with a floor).
    vmem_est = 20 * T_pad * tile_b * 4
    vmem_limit = int(min(64 * 1024 * 1024, max(2 * vmem_est, 16 * 1024 * 1024)))

    # Fold dt powers into the weights (no divisions inside the kernel).
    # Note: for extreme dt (<< 1e-2) the pre-scaled weights may over/underflow
    # differently than the per-step division in the reference.
    inv_dt2 = 1.0 / (float(dt) * float(dt))
    kernel = functools.partial(
        _comfort_cost_kernel,
        t_valid=T,
        wj_lat=float(lateral_jerk_weight) * inv_dt2 ** 3,
        wj_lon=float(longitudinal_jerk_weight) * inv_dt2 ** 3,
        wa_lat=float(lateral_accel_weight) * inv_dt2 ** 2,
        wa_lon=float(longitudinal_accel_weight) * inv_dt2 ** 2,
    )

    out = pl.pallas_call(
        kernel,
        out_shape=jax.ShapeDtypeStruct((1, B_arr), jnp.float32),
        grid=(grid_b,),
        in_specs=[pl.BlockSpec((2, T_pad, tile_b), lambda i: (0, 0, i))],
        out_specs=pl.BlockSpec((1, tile_b), lambda i: (0, i)),
        compiler_params=pltpu.CompilerParams(
            dimension_semantics=("parallel",),
            vmem_limit_bytes=vmem_limit),
    )(xy)
    return out[0, :B]


def comfort_cost_ref(trajectories, dt=0.1,
                     lateral_jerk_weight=1.0, longitudinal_jerk_weight=1.0,
                     lateral_accel_weight=0.5, longitudinal_accel_weight=0.5):
    """Pure-JAX reference mirroring the PyTorch module (sum over non-batch dims)."""
    vel = (trajectories[:, 1:] - trajectories[:, :-1]) / dt
    acc = (vel[:, 1:] - vel[:, :-1]) / dt
    heading = jnp.arctan2(vel[:, :, 1], vel[:, :, 0])
    cos_t, sin_t = jnp.cos(heading), jnp.sin(heading)
    lon_acc = acc[:, :, 0] * cos_t[:, 1:] + acc[:, :, 1] * sin_t[:, 1:]
    lat_acc = -acc[:, :, 0] * sin_t[:, 1:] + acc[:, :, 1] * cos_t[:, 1:]
    lon_jerk = (lon_acc[:, 1:] - lon_acc[:, :-1]) / dt
    lat_jerk = (lat_acc[:, 1:] - lat_acc[:, :-1]) / dt
    return (lateral_jerk_weight * jnp.sum(lat_jerk ** 2, axis=1)
            + longitudinal_jerk_weight * jnp.sum(lon_jerk ** 2, axis=1)
            + lateral_accel_weight * jnp.sum(lat_acc ** 2, axis=1)
            + longitudinal_accel_weight * jnp.sum(lon_acc ** 2, axis=1))


if __name__ == "__main__":
    dt = 0.1

    # Small deterministic case (single block, padded lanes).
    B, T = 2, 16
    steps = 0.5 + 0.1 * jax.random.normal(jax.random.PRNGKey(0), (B, T, 2),
                                          dtype=jnp.float32)
    trajectories = jnp.cumsum(steps, axis=1).astype(jnp.float32)
    out = jax.block_until_ready(comfort_cost(trajectories, dt))
    ref = comfort_cost_ref(trajectories, dt)
    assert out.shape == (B,)
    assert jnp.allclose(out, ref, rtol=1e-3, atol=1e-3), (out, ref)

    # Multi-tile case: exercises the no-B-pad partial last block and the
    # >=2-grid-step (megacore-friendly) tiling path.
    B2, T2 = 260, 24
    steps2 = 0.5 + 0.1 * jax.random.normal(jax.random.PRNGKey(1), (B2, T2, 2),
                                           dtype=jnp.float32)
    trajectories2 = jnp.cumsum(steps2, axis=1).astype(jnp.float32)
    out2 = jax.block_until_ready(comfort_cost(trajectories2, dt))
    ref2 = comfort_cost_ref(trajectories2, dt)
    assert out2.shape == (B2,)
    assert jnp.allclose(out2, ref2, rtol=1e-3, atol=1e-3), (out2, ref2)

    print("KERNEL_OK")
</pallas_src>

<mosaic_0001>
module attributes {stable_mosaic.version = 11 : i64} {
  func.func @_comfort_cost_kernel(%arg0: i32, %arg1: memref<2x16x128xf32, #tpu.memory_space<vmem>>, %arg2: memref<1x128xf32, #tpu.memory_space<vmem>>) attributes {dimension_semantics = [#tpu.dimension_semantics<parallel>], iteration_bounds = array<i64: 1>, scalar_prefetch = 0 : i64, scratch_operands = 0 : i64, tpu.core_type = #tpu.core_type<tc>, window_params = [{transform_indices = @transform_0, window_bounds = array<i64: 2, 16, 128>}, {transform_indices = @transform_1, window_bounds = array<i64: 1, 128>}]} {
    %c0 = arith.constant 0 : index
    %c0_0 = arith.constant 0 : index
    %c0_1 = arith.constant 0 : index
    %0 = vector.load %arg1[%c0, %c0_0, %c0_1] : memref<2x16x128xf32, #tpu.memory_space<vmem>>, vector<1x16x128xf32>
    %1 = vector.shape_cast %0 : vector<1x16x128xf32> to vector<16x128xf32>
    %c1 = arith.constant 1 : index
    %c0_2 = arith.constant 0 : index
    %c0_3 = arith.constant 0 : index
    %2 = vector.load %arg1[%c1, %c0_2, %c0_3] : memref<2x16x128xf32, #tpu.memory_space<vmem>>, vector<1x16x128xf32>
    %3 = vector.shape_cast %2 : vector<1x16x128xf32> to vector<16x128xf32>
    %c15_i32 = arith.constant 15 : i32
    %4 = tpu.dynamic_rotate %1 by %c15_i32 dim 0 : vector<16x128xf32>, i32 -> vector<16x128xf32>
    %5 = arith.subf %4, %1 : vector<16x128xf32>
    %c15_i32_4 = arith.constant 15 : i32
    %6 = tpu.dynamic_rotate %3 by %c15_i32_4 dim 0 : vector<16x128xf32>, i32 -> vector<16x128xf32>
    %7 = arith.subf %6, %3 : vector<16x128xf32>
    %c15_i32_5 = arith.constant 15 : i32
    %8 = tpu.dynamic_rotate %5 by %c15_i32_5 dim 0 : vector<16x128xf32>, i32 -> vector<16x128xf32>
    %c15_i32_6 = arith.constant 15 : i32
    %9 = tpu.dynamic_rotate %7 by %c15_i32_6 dim 0 : vector<16x128xf32>, i32 -> vector<16x128xf32>
    %10 = arith.subf %8, %5 : vector<16x128xf32>
    %11 = arith.subf %9, %7 : vector<16x128xf32>
    %12 = arith.mulf %8, %8 : vector<16x128xf32>
    %13 = arith.mulf %9, %9 : vector<16x128xf32>
    %14 = arith.addf %12, %13 : vector<16x128xf32>
    %cst = arith.constant 1.000000e-36 : f32
    %15 = vector.broadcast %cst : f32 to vector<16x128xf32>
    %16 = arith.maximumf %14, %15 : vector<16x128xf32>
    %17 = math.rsqrt %16 : vector<16x128xf32>
    %cst_7 = arith.constant 0.000000e+00 : f32
    %18 = vector.broadcast %cst_7 : f32 to vector<16x128xf32>
    %19 = arith.cmpf ogt, %14, %18 : vector<16x128xf32>
    %20 = arith.mulf %8, %17 : vector<16x128xf32>
    %cst_8 = arith.constant 1.000000e+00 : f32
    %21 = vector.broadcast %cst_8 : f32 to vector<16x128xf32>
    %22 = arith.select %19, %20, %21 : vector<16x128xi1>, vector<16x128xf32>
    %23 = arith.mulf %9, %17 : vector<16x128xf32>
    %cst_9 = arith.constant 0.000000e+00 : f32
    %24 = vector.broadcast %cst_9 : f32 to vector<16x128xf32>
    %25 = arith.select %19, %23, %24 : vector<16x128xi1>, vector<16x128xf32>
    %26 = arith.mulf %10, %22 : vector<16x128xf32>
    %27 = arith.mulf %11, %25 : vector<16x128xf32>
    %28 = arith.addf %26, %27 : vector<16x128xf32>
    %29 = arith.mulf %11, %22 : vector<16x128xf32>
    %30 = arith.mulf %10, %25 : vector<16x128xf32>
    %31 = arith.subf %29, %30 : vector<16x128xf32>
    %c15_i32_10 = arith.constant 15 : i32
    %32 = tpu.dynamic_rotate %28 by %c15_i32_10 dim 0 : vector<16x128xf32>, i32 -> vector<16x128xf32>
    %33 = arith.subf %32, %28 : vector<16x128xf32>
    %c15_i32_11 = arith.constant 15 : i32
    %34 = tpu.dynamic_rotate %31 by %c15_i32_11 dim 0 : vector<16x128xf32>, i32 -> vector<16x128xf32>
    %35 = arith.subf %34, %31 : vector<16x128xf32>
    %cst_12 = arith.constant 5.000000e+03 : f32
    %36 = vector.broadcast %cst_12 : f32 to vector<16x128xf32>
    %37 = arith.mulf %36, %31 : vector<16x128xf32>
    %38 = arith.mulf %37, %31 : vector<16x128xf32>
    %cst_13 = arith.constant 5.000000e+03 : f32
    %39 = vector.broadcast %cst_13 : f32 to vector<16x128xf32>
    %40 = arith.mulf %39, %28 : vector<16x128xf32>
    %41 = arith.mulf %40, %28 : vector<16x128xf32>
    %42 = arith.addf %38, %41 : vector<16x128xf32>
    %cst_14 = arith.constant 1.000000e+06 : f32
    %43 = vector.broadcast %cst_14 : f32 to vector<16x128xf32>
    %44 = arith.mulf %43, %35 : vector<16x128xf32>
    %45 = arith.mulf %44, %35 : vector<16x128xf32>
    %cst_15 = arith.constant 1.000000e+06 : f32
    %46 = vector.broadcast %cst_15 : f32 to vector<16x128xf32>
    %47 = arith.mulf %46, %33 : vector<16x128xf32>
    %48 = arith.mulf %47, %33 : vector<16x128xf32>
    %49 = arith.addf %45, %48 : vector<16x128xf32>
    %50 = tpu.iota {dimensions = array<i32: 1>} : vector<1x16xi32>
    %c14_i32 = arith.constant 14 : i32
    %51 = vector.broadcast %c14_i32 : i32 to vector<1x16xi32>
    %52 = arith.cmpi slt, %50, %51 : vector<1x16xi32>
    %53 = arith.extui %52 : vector<1x16xi1> to vector<1x16xi32>
    %54 = arith.sitofp %53 : vector<1x16xi32> to vector<1x16xf32>
    %c13_i32 = arith.constant 13 : i32
    %55 = vector.broadcast %c13_i32 : i32 to vector<1x16xi32>
    %56 = arith.cmpi slt, %50, %55 : vector<1x16xi32>
    %57 = arith.extui %56 : vector<1x16xi1> to vector<1x16xi32>
    %58 = arith.sitofp %57 : vector<1x16xi32> to vector<1x16xf32>
    %cst_16 = arith.constant dense<0.000000e+00> : vector<1x128xf32>
    %59 = tpu.matmul %54, %42, %cst_16 {dimension_numbers = #tpu.dot_dimension_numbers<[1], [0], [0], [1], [0, 0, 1, 1], [], []>} : vector<1x16xf32>, vector<16x128xf32>, vector<1x128xf32> -> vector<1x128xf32>
    %cst_17 = arith.constant dense<0.000000e+00> : vector<1x128xf32>
    %60 = tpu.matmul %58, %49, %cst_17 {dimension_numbers = #tpu.dot_dimension_numbers<[1], [0], [0], [1], [0, 0, 1, 1], [], []>} : vector<1x16xf32>, vector<16x128xf32>, vector<1x128xf32> -> vector<1x128xf32>
    %61 = arith.addf %59, %60 : vector<1x128xf32>
    %c0_18 = arith.constant 0 : index
    %c0_19 = arith.constant 0 : index
    %62 = vector.load %arg2[%c0_18, %c0_19] : memref<1x128xf32, #tpu.memory_space<vmem>>, vector<1x128xf32>
    tpu.vector_store %arg2[%c0_18, %c0_19], %61 {strides = array<i32>} : memref<1x128xf32, #tpu.memory_space<vmem>>, vector<1x128xf32>,
    return
  }
  func.func @transform_0(%arg0: i32) -> (i32, i32, i32) {
    %c0_i32 = arith.constant 0 : i32
    %c0_i32_0 = arith.constant 0 : i32
    %c0_i32_1 = arith.constant 0 : i32
    return %c0_i32, %c0_i32_0, %arg0 : i32, i32, i32
  }
  func.func @transform_1(%arg0: i32) -> (i32, i32) {
    %c0_i32 = arith.constant 0 : i32
    %c0_i32_0 = arith.constant 0 : i32
    return %c0_i32, %arg0 : i32, i32
  }
}

</mosaic_0001>

<bundles_post_ra>
// kernel: tpu_custom_call.1
= control target key start
LH: loop header
LB: loop body
LE: loop exit
PB: predicated region body
PF: predicated region fallthrough
CT: control target
= control target key end

     0   :  { %6 = vsyncpa [#allocation3], 0  ;;  %s454_s0 = inlined_call_operand.hbm [shape: f32[2,16,128], index: 0, kind: input, shape index: {}]   ;;  %s455_s1 = inlined_call_operand.hbm [shape: f32[1,128], index: 1, kind: output, shape index: {}]  }
   0x1   :  { %7 = vsyncpa [#allocation4], 0  ;;  %s380_s6 = smov [#allocation2]   ;;  %s332_s10 = scalar_lea.hbm %s454_s0, 512 }
   0x2   :  { %s13_s7 = sshll.u32 %s380_s6, 4  ;;  %p333_p0 = scmp.ne.s32.totalorder %s454_s0, %s332_s10  ;;  %s14_s7 = int_to_ptr.vmem [resolvable:$true] %s13_s7 }
   0x3   :  { %p336_p1 = scmp.lt.u32.totalorder %s332_s10, %s454_s0 }
   0x5   :  { %p338_p2 = pnand %p336_p1, %p333_p0 }
   0x7   :  { %341 = shalt.err (!%p338_p2)
}
   0x8   :  { %s342_s15 = scalar_lea.vmem %s14_s7, 512  ;;  %p347_p4 = scmp.lt.s32.totalorder %s14_s7, %s14_s7 }
   0x9   :  { %p343_p3 = scmp.ne.s32.totalorder %s14_s7, %s342_s15  ;;  %p348_p5 = scmp.lt.s32.totalorder %s342_s15, %s342_s15 }
   0xb   :  { %p349_p6 = por %p348_p5, %p347_p4 }
   0xd   :  { %p350_p7 = pnand %p349_p6, %p343_p3 }
   0xf   :  { %353 = shalt.err (!%p350_p7)
}
  0x10   :  { %s381_s16 = smov 128   ;;  %s382_s17 = smov 8  }
  0x11   :  { %19 = dma.hbm_to_vmem [thread:$0]  %s454_s0, 512, %s14_s7, [#allocation3], %s381_s16, %s381_s16, %s382_s17  }
  0x12   :  { %376 = dma.done.wait [#allocation3], 512  }
  0x13   :  { %377 = vsyncadd [#allocation3], 4294966784  ;;  %v30_v0 = vlaneseq  ;;  %v383_v1 = vmov 0.0|0.0   ;;  %vm384_vm0 = vmmov 0   ;;  %v385_v2 = vmov 0.0   ;;  %v23_v4 = vld [vmem:[#allocation2] sm:$0xff] }
  0x14   :  { %317 = vmatprep.subr.bf16.mxu0 %v383_v1  ;;  %314 = vmatprep.subr.bf16.mxu1 %v383_v1  ;;  %v24_v5 = vld [vmem:[#allocation2 + $0x8] sm:$0xff]  ;;  %v26_v6 = vld [vmem:[#allocation2 + $0x10] sm:$0xff]  ;;  %v27_v7 = vld [vmem:[#allocation2 + $0x18] sm:$0xff]  ;;  %v28_v8 = vrot.slane %v23_v4, 1  ;;  %vm127_vm5 = vcmask 130048   ;;  %s386_s0 = smov [#allocation5]  }
  0x15   :  { %311 = vmatprep.mubr.msk.f32.mxu0 %vm384_vm0, %v385_v2  ;;  %304 = vmatprep.mubr.msk.f32.mxu1 %vm384_vm0, %v385_v2  ;;  %v412_v3 = vshrl.u32 %v30_v0, 7  ;;  %v29_v9 = vrot.slane %v24_v5, 1  ;;  %v37_v10 = vrot.slane %v26_v6, 1  ;;  %v38_v11 = vrot.slane %v27_v7, 1  ;;  %s281_s20 = sshll.u32 %s386_s0, 4  ;;  %s282_s20 = int_to_ptr.vmem [resolvable:$true] %s281_s20 }
  0x16   :  { %s354_s21 = scalar_lea.vmem %s282_s20, 16  ;;  %s358_s22 = scalar_lea.vmem %s282_s20, 32 }
  0x17   :  { %vm32_vm1 = vcmp.lt.s32.totalorder %v412_v3, 7  ;;  %p355_p8 = scmp.ne.s32.totalorder %s282_s20, %s354_s21  ;;  %p359_p9 = scmp.lt.s32.totalorder %s282_s20, %s282_s20 }
  0x18   :  { %v33_v12 = vsel %vm32_vm1, %v28_v8, %v29_v9  ;;  %v34_v13 = vsel %vm32_vm1, %v29_v9, %v28_v8  ;;  %v39_v16 = vsel %vm32_vm1, %v37_v10, %v38_v11  ;;  %v40_v17 = vsel %vm32_vm1, %v38_v11, %v37_v10  ;;  %p360_p10 = scmp.lt.s32.totalorder %s358_s22, %s354_s21 }
  0x19   :  { %v35_v14 = vsub.f32 %v33_v12, %v23_v4  ;;  %v36_v15 = vsub.f32 %v34_v13, %v24_v5  ;;  %v41_v18 = vsub.f32 %v39_v16, %v26_v6  ;;  %v42_v19 = vsub.f32 %v40_v17, %v27_v7 }
  0x1a   :  { %v120_v5 = vand.u32 127, %v30_v0  ;;  %p361_p11 = por %p360_p10, %p359_p9 }
  0x1b   :  { %v43_v20 = vrot.slane %v35_v14, 1  ;;  %v44_v21 = vrot.slane %v36_v15, 1  ;;  %v47_v22 = vrot.slane %v41_v18, 1  ;;  %v48_v23 = vrot.slane %v42_v19, 1 }
  0x1c   :  { %vm121_vm4 = vcmp.lt.s32.totalorder %v120_v5, 14  ;;  %vm124_vm6 = vcmp.lt.s32.totalorder %v120_v5, 13  ;;  %p362_p12 = pnand %p361_p11, %p355_p8 }
  0x1d   :  { %v45_v24 = vsel %vm32_vm1, %v43_v20, %v44_v21  ;;  %v46_v25 = vsel %vm32_vm1, %v44_v21, %v43_v20  ;;  %v49_v26 = vsel %vm32_vm1, %v47_v22, %v48_v23  ;;  %v50_v27 = vsel %vm32_vm1, %v48_v23, %v47_v22 }
  0x1e   :  { %v55_v28 = vmul.f32 %v45_v24, %v45_v24  ;;  %v56_v29 = vmul.f32 %v46_v25, %v46_v25  ;;  %v57_v30 = vmul.f32 %v49_v26, %v49_v26  ;;  %v58_v31 = vmul.f32 %v50_v27, %v50_v27 }
  0x1f   :  { %v51_v37 = vsub.f32 %v45_v24, %v35_v14  ;;  %v52_v38 = vsub.f32 %v46_v25, %v36_v15  ;;  %v53_v39 = vsub.f32 %v49_v26, %v41_v18  ;;  %v54_v41 = vsub.f32 %v50_v27, %v42_v19 }
  0x20   :  { %v59_v32 = vadd.f32 %v57_v30, %v55_v28  ;;  %v60_v33 = vadd.f32 %v58_v31, %v56_v29 }
  0x22   :  { %v61_v34 = vmax.f32 %v59_v32, 1e-36  ;;  %v62_v35 = vmax.f32 %v60_v33, 1e-36  ;;  %vm65_vm2 = vcmp.gt.f32.partialorder %v59_v32, 0.0  ;;  %vm66_vm3 = vcmp.gt.f32.partialorder %v60_v33, 0.0 }
  0x23   :  { %v290_v32 = vsel %vm121_vm4, 1.0, %v385_v2 }
  0x24   :  { %328 = vrsqrt.f32 %v61_v34 }
  0x25   :  { %330 = vrsqrt.f32 %v62_v35  ;;  %v291_v35 = vsel %vm124_vm6, 1.0, %v385_v2 }
  0x2e   :  { %v329_v36 = vpop.eup %328 }
  0x2f   :  { %v331_v40 = vpop.eup %330  ;;  %v67_v42 = vmul.f32 %v329_v36, %v45_v24  ;;  %v71_v43 = vmul.f32 %v329_v36, %v49_v26 }
  0x30   :  { %v68_v44 = vmul.f32 %v331_v40, %v46_v25  ;;  %v72_v45 = vmul.f32 %v331_v40, %v50_v27 }
  0x31   :  { %v69_v46 = vsel %vm65_vm2, %v67_v42, 1.0  ;;  %v73_v47 = vsel %vm65_vm2, %v71_v43, 0.0 }
  0x32   :  { %v70_v48 = vsel %vm66_vm3, %v68_v44, 1.0  ;;  %v74_v49 = vsel %vm66_vm3, %v72_v45, 0.0  ;;  %v75_v50 = vmul.f32 %v69_v46, %v51_v37  ;;  %v77_v51 = vmul.f32 %v73_v47, %v53_v39 }
  0x33   :  { %v76_v52 = vmul.f32 %v70_v48, %v52_v38  ;;  %v78_v53 = vmul.f32 %v74_v49, %v54_v41  ;;  %v81_v54 = vmul.f32 %v69_v46, %v53_v39  ;;  %v82_v55 = vmul.f32 %v70_v48, %v54_v41 }
  0x34   :  { %v79_v56 = vadd.f32 %v77_v51, %v75_v50  ;;  %v83_v57 = vmul.f32 %v73_v47, %v51_v37  ;;  %v84_v58 = vmul.f32 %v74_v49, %v52_v38 }
  0x35   :  { %v80_v59 = vadd.f32 %v78_v53, %v76_v52 }
  0x36   :  { %v85_v60 = vsub.f32 %v81_v54, %v83_v57  ;;  %v86_v61 = vsub.f32 %v82_v55, %v84_v58  ;;  %v103_v62 = vmul.f32 5000.0, %v79_v56  ;;  %v87_v63 = vrot.slane %v79_v56, 1 }
  0x37   :  { %v104_v1 = vmul.f32 5000.0, %v80_v59  ;;  %v88_v4 = vrot.slane %v80_v59, 1 }
  0x38   :  { %v99_v6 = vmul.f32 5000.0, %v85_v60  ;;  %v100_v7 = vmul.f32 5000.0, %v86_v61  ;;  %v105_v8 = vmul.f32 %v103_v62, %v79_v56  ;;  %v93_v9 = vrot.slane %v85_v60, 1 }
  0x39   :  { %v106_v10 = vmul.f32 %v104_v1, %v80_v59  ;;  %v89_v11 = vsel %vm32_vm1, %v87_v63, %v88_v4  ;;  %v90_v12 = vsel %vm32_vm1, %v88_v4, %v87_v63  ;;  %v94_v13 = vrot.slane %v86_v61, 1 }
  0x3a   :  { %v101_v14 = vmul.f32 %v99_v6, %v85_v60  ;;  %v102_v15 = vmul.f32 %v100_v7, %v86_v61  ;;  %v91_v16 = vsub.f32 %v89_v11, %v79_v56  ;;  %v92_v17 = vsub.f32 %v90_v12, %v80_v59 }
  0x3b   :  { %v95_v18 = vsel %vm32_vm1, %v93_v9, %v94_v13  ;;  %v96_v0 = vsel %vm32_vm1, %v94_v13, %v93_v9 }
  0x3c   :  { %v107_v19 = vadd.f32 %v105_v8, %v101_v14  ;;  %v108_v20 = vadd.f32 %v106_v10, %v102_v15  ;;  %v97_v21 = vsub.f32 %v95_v18, %v85_v60  ;;  %v98_v22 = vsub.f32 %v96_v0, %v86_v61 }
  0x3d   :  { %v113_v23 = vmul.f32 1000000.0, %v91_v16  ;;  %v114_v24 = vmul.f32 1000000.0, %v92_v17 }
  0x3e   :  { %v318_v25 = vpack.c.bf16 %v108_v20, %v107_v19  ;;  %v109_v26 = vmul.f32 1000000.0, %v97_v21  ;;  %v110_v27 = vmul.f32 1000000.0, %v98_v22 }
  0x3f   :  { %v115_v28 = vmul.f32 %v113_v23, %v91_v16  ;;  %v116_v29 = vmul.f32 %v114_v24, %v92_v17 }
  0x40   :  { %319 = vmatpush3.bf16.msra.mxu0 %v318_v25  ;;  %v111_v30 = vmul.f32 %v109_v26, %v97_v21  ;;  %v112_v31 = vmul.f32 %v110_v27, %v98_v22 }
  0x42   :  { %v117_v3 = vadd.f32 %v115_v28, %v111_v30  ;;  %v118_v33 = vadd.f32 %v116_v29, %v112_v31 }
  0x43   :  { %312 = vmatmul.mubr.msk.f32.vlgmr.msra.gmra.mrb[0].mxu0 %vm127_vm5, %v290_v32 }
  0x44   :  { %v315_v34 = vpack.c.bf16 %v118_v33, %v117_v3 }
  0x46   :  { %316 = vmatpush3.bf16.msra.mxu1 %v315_v34 }
  0x49   :  { %305 = vmatmul.mubr.msk.f32.vlgmr.msra.gmra.mrb[0].mxu1 %vm127_vm5, %v291_v35 }
 0x116   :  { %v270_v36 = vpop.f32.mrb[0].mxu0 }
 0x117   :  { %v313_v37 = vpop.f32.mrb[1].mxu0 }
 0x11c   :  { %v197_v38 = vpop.f32.mrb[0].mxu1 }
 0x11d   :  { %v271_v39 = vadd.f32 %v270_v36, %v197_v38  ;;  %v306_v40 = vpop.f32.mrb[1].mxu1 }
 0x11f   :  { %274 = vst [vmem:[#allocation5] sm:$0x1] %v271_v39 }
 0x120   :  { %365 = shalt.err (!%p362_p12)
}
 0x121   :  { %s366_s25 = scalar_lea.hbm %s455_s1, 16 }
 0x122   :  { %p367_p13 = scmp.ne.s32.totalorder %s455_s1, %s366_s25  ;;  %p370_p0 = scmp.lt.u32.totalorder %s366_s25, %s455_s1 }
 0x124   :  { %p372_p1 = pnand %p370_p0, %p367_p13 }
 0x126   :  { %375 = shalt.err (!%p372_p1)
}
 0x127   :  { %284 = dma.vmem_to_hbm [thread:$0]  %s282_s20, 16, %s455_s1, [#allocation4]  }
 0x128   :  { %378 = dma.done.wait [#allocation4], 16  }
 0x129   :  { %379 = vsyncadd [#allocation4], 4294967280 }
 0x12a   :  { %288 = vsyncpa [#allocation3], 1 }
 0x12b   :  { %289 = vsyncpa [#allocation4], 1 }

</bundles_post_ra>
